<compile_context>
chip_gen: v7x
topology: tpu7x:2x2x1
jax: 0.10.0
libtpu: 0.0.40
codegen_flags: <defaults>
</compile_context>

<pallas_src>
import functools

import jax
import jax.numpy as jnp
import numpy as np
from jax.experimental import pallas as pl
from jax.experimental.pallas import tpu as pltpu

EPS = 1e-5            # nn.BatchNorm1d default eps
PATCH = 4             # stride-4 patchify stand-in for densenet121.features
C_FEAT = 1024         # densenet121 feature channels -> cat doubles to 2048


def _round_up(x, m):
    return (x + m - 1) // m * m


# ----------------------------------------------------------------------------
# Fused kernel: patchify-matmul -> ReLU -> spatial-sum (accumulated across the
# HW grid axis) -> mean -> cat([x, x]) folded into a split BN scale/bias write.
# Grid = (batch tiles [parallel], channel blocks [parallel], HW tiles [arbitrary]).
# ----------------------------------------------------------------------------
def _fused_kernel(p_ref, w_ref, scale_ref, bias_ref, out_ref, acc_ref, *, inv_hw):
    hw = pl.program_id(2)

    @pl.when(hw == 0)
    def _():
        acc_ref[...] = jnp.zeros_like(acc_ref)

    bt, ht, kp = p_ref.shape
    cn = w_ref.shape[1]
    # (b_tile, hw_tile, Kp) -> (b_tile*hw_tile, Kp): one MXU matmul per step
    # over this channel block.
    p = p_ref[...].reshape(bt * ht, kp)
    f = jnp.dot(p, w_ref[...], preferred_element_type=jnp.float32)
    f = jnp.maximum(f, 0.0)                                  # F.relu(x)
    acc_ref[...] += f.reshape(bt, ht, cn).sum(axis=1)        # partial GAP sum

    @pl.when(hw == pl.num_programs(2) - 1)
    def _():
        pooled = acc_ref[...] * inv_hw                       # AdaptiveAvgPool2d(1)
        sb = scale_ref[...]                                  # (2, Cn) BN scale halves
        bb = bias_ref[...]                                   # (2, Cn) BN bias halves
        # torch.cat([x, x], 1) + BatchNorm1d(2048) (eval) == two C-wide
        # affine applications of the precomputed scale/bias halves.
        out_ref[0] = pooled * sb[0:1, :] + bb[0:1, :]
        out_ref[1] = pooled * sb[1:2, :] + bb[1:2, :]


# ----------------------------------------------------------------------------
# Wrapper: im2col (plain-JAX glue), padding/tiling, BN folding, pallas_call.
# ----------------------------------------------------------------------------
@functools.partial(jax.jit, static_argnames=("b_tile", "hw_tile", "n_block"))
def densenet121_reid_forward(x, w_patch, gamma, beta, running_mean, running_var,
                             *, b_tile=8, hw_tile=256, n_block=256):
    # TODO(synk): the real `model_base.features` is an external pretrained
    # DenseNet-121 backbone; stand-in here is a 4x4 stride-4 patchify conv.
    B, Cin, H, W = x.shape
    Hp, Wp = H // PATCH, W // PATCH
    HW = Hp * Wp
    K = Cin * PATCH * PATCH
    C = w_patch.shape[1]
    C2 = 2 * C

    # Cast to bf16 BEFORE im2col so the materialized (B, HW, K) patch array
    # costs half the HBM write+read.  MXU accumulation stays f32.
    xb = x.astype(jnp.bfloat16)
    patches = xb.reshape(B, Cin, Hp, PATCH, Wp, PATCH)
    patches = patches.transpose(0, 2, 4, 1, 3, 5).reshape(B, HW, K)

    # K padded to 128: full-lane vregs and exact fill of v5e's 128-deep MXU
    # (aligned sub-tile for v6e/v7x).  Zero padding is exact: padded columns
    # contribute 0 to the dot product.
    Kp = _round_up(K, 128)

    # Tiles: batch tile always a multiple of 8 (full sublanes, unmasked output
    # stores); hw tile a multiple of 8 capped by the padded HW extent.
    # Zero-padding is exact: ReLU(0-patch @ W) = 0 contributes nothing to the
    # pooled sum and we divide by the true HW; padded batch rows are sliced off.
    b_tile = _round_up(max(1, min(b_tile, B)), 8)
    Bp = _round_up(B, b_tile)
    hw_tile = max(8, min(_round_up(hw_tile, 8), _round_up(HW, 8)))
    HWp = _round_up(HW, hw_tile)

    # Output-channel blocking: second "parallel" grid axis (feeds both v7x
    # TensorCores even at batch-grid==1) and bounds the live f32 (bt*ht, Cn)
    # matmul/ReLU intermediate.
    Cn = n_block if (C % n_block == 0 and n_block % 128 == 0) else C
    NB = C // Cn

    patches = jnp.pad(patches, ((0, Bp - B), (0, HWp - HW), (0, Kp - K)))
    w = jnp.pad(w_patch, ((0, Kp - K), (0, 0))).astype(jnp.bfloat16)

    # Fold eval-mode BatchNorm1d(2048) into per-half (2, C) scale/bias.
    scale_full = gamma.reshape(C2) * jax.lax.rsqrt(running_var.reshape(C2) + EPS)
    bias_full = beta.reshape(C2) - running_mean.reshape(C2) * scale_full
    scale = scale_full.reshape(2, C).astype(jnp.float32)
    bias = bias_full.reshape(2, C).astype(jnp.float32)

    grid = (Bp // b_tile, NB, HWp // hw_tile)
    kernel = functools.partial(_fused_kernel, inv_hw=1.0 / HW)

    # Rough per-step VMEM (double-buffered blocks, accumulator, f32 matmul /
    # ReLU intermediates); cap the scoped limit at 48 MiB so it leaves
    # headroom on v7x's 64 MiB physical VMEM.
    per_step = (2 * b_tile * hw_tile * Kp * 2          # patches (bf16, 2 bufs)
                + 2 * Kp * Cn * 2                      # weight block
                + 2 * 2 * (2 * Cn) * 4                 # BN scale + bias blocks
                + 2 * 2 * b_tile * Cn * 4              # output block
                + b_tile * Cn * 4                      # accumulator scratch
                + 2 * b_tile * hw_tile * Cn * 4)       # matmul + ReLU f32
    vmem_limit = int(min(48 * 1024 * 1024, max(32 * 1024 * 1024, 2 * per_step)))

    out = pl.pallas_call(
        kernel,
        out_shape=jax.ShapeDtypeStruct((2, Bp, C), jnp.float32),
        grid_spec=pltpu.PrefetchScalarGridSpec(
            num_scalar_prefetch=0,
            grid=grid,
            in_specs=[
                pl.BlockSpec((b_tile, hw_tile, Kp), lambda b, n, h: (b, h, 0)),
                pl.BlockSpec((Kp, Cn), lambda b, n, h: (0, n)),      # weight block
                pl.BlockSpec((2, Cn), lambda b, n, h: (0, n)),       # BN scale halves
                pl.BlockSpec((2, Cn), lambda b, n, h: (0, n)),       # BN bias halves
            ],
            out_specs=pl.BlockSpec((2, b_tile, Cn), lambda b, n, h: (0, b, n)),
            scratch_shapes=[pltpu.VMEM((b_tile, Cn), jnp.float32)],
        ),
        compiler_params=pltpu.CompilerParams(
            dimension_semantics=("parallel", "parallel", "arbitrary"),
            vmem_limit_bytes=vmem_limit,
        ),
    )(patches, w, scale, bias)

    # (2, Bp, C) -> (Bp, 2C): per row [half0 | half1] == torch.cat([x, x], 1)
    # after the split BN application.
    return out.transpose(1, 0, 2).reshape(Bp, C2)[:B]


# ----------------------------------------------------------------------------
# Pure-JAX reference for verification
# ----------------------------------------------------------------------------
def reference(x, w_patch, gamma, beta, running_mean, running_var):
    B, Cin, H, W = x.shape
    Hp, Wp = H // PATCH, W // PATCH
    patches = x.reshape(B, Cin, Hp, PATCH, Wp, PATCH)
    patches = patches.transpose(0, 2, 4, 1, 3, 5).reshape(
        B, Hp * Wp, Cin * PATCH * PATCH)
    feat = jnp.einsum("bpk,kn->bpn", patches, w_patch)
    feat = jnp.maximum(feat, 0.0)
    pooled = feat.mean(axis=1)
    cat = jnp.concatenate([pooled, pooled], axis=1)
    return (cat - running_mean) * jax.lax.rsqrt(running_var + EPS) * gamma + beta


if __name__ == "__main__":
    key = jax.random.PRNGKey(0)
    kx, kw, kg, kb, km, kv = jax.random.split(key, 6)

    B, Cin, H, W = 2, 3, 16, 16                          # small NCHW image input
    x = jax.random.normal(kx, (B, Cin, H, W), jnp.float32)

    K = Cin * PATCH * PATCH
    C2 = 2 * C_FEAT
    w_patch = jax.random.normal(kw, (K, C_FEAT), jnp.float32) * 0.05
    gamma = 1.0 + 0.1 * jax.random.normal(kg, (1, C2), jnp.float32)
    beta = 0.1 * jax.random.normal(kb, (1, C2), jnp.float32)
    running_mean = 0.1 * jax.random.normal(km, (1, C2), jnp.float32)
    running_var = jax.random.uniform(kv, (1, C2), jnp.float32,
                                     minval=0.5, maxval=1.5)

    # hw_tile=8 forces 2 reduction steps at this tiny size so the accumulator
    # path (init / accumulate / finalize) is exercised; n_block=256 exercises
    # the channel-block grid axis (NB=4).
    out = densenet121_reid_forward(x, w_patch, gamma, beta,
                                   running_mean, running_var,
                                   b_tile=8, hw_tile=8, n_block=256)
    out = jax.block_until_ready(out)

    ref = reference(x, w_patch, gamma, beta, running_mean, running_var)
    # bf16 MXU inputs with f32 accumulation -> loosened tolerance vs f32 ref.
    np.testing.assert_allclose(np.asarray(out), np.asarray(ref),
                               rtol=2e-2, atol=2e-2)
    assert out.shape == (B, 2048)
    print("KERNEL_OK")
</pallas_src>

<mosaic_0001>
module attributes {stable_mosaic.version = 11 : i64} {
  func.func @_fused_kernel(%arg0: i32, %arg1: i32, %arg2: i32, %arg3: memref<8x8x128xbf16, #tpu.memory_space<vmem>>, %arg4: memref<128x256xbf16, #tpu.memory_space<vmem>>, %arg5: memref<2x256xf32, #tpu.memory_space<vmem>>, %arg6: memref<2x256xf32, #tpu.memory_space<vmem>>, %arg7: memref<2x8x256xf32, #tpu.memory_space<vmem>>, %arg8: memref<8x256xf32, #tpu.memory_space<vmem>>) attributes {dimension_semantics = [#tpu.dimension_semantics<parallel>, #tpu.dimension_semantics<parallel>, #tpu.dimension_semantics<arbitrary>], iteration_bounds = array<i64: 1, 4, 2>, scalar_prefetch = 0 : i64, scratch_operands = 1 : i64, tpu.core_type = #tpu.core_type<tc>, window_params = [{transform_indices = @transform_0, window_bounds = array<i64: 8, 8, 128>}, {transform_indices = @transform_1, window_bounds = array<i64: 128, 256>}, {transform_indices = @transform_2, window_bounds = array<i64: 2, 256>}, {transform_indices = @transform_3, window_bounds = array<i64: 2, 256>}, {transform_indices = @transform_4, window_bounds = array<i64: 2, 8, 256>}]} {
    %c0_i32 = arith.constant 0 : i32
    %0 = arith.cmpi eq, %arg2, %c0_i32 : i32
    %1 = arith.extui %0 : i1 to i32
    %c0_i32_0 = arith.constant 0 : i32
    %2 = arith.cmpi ne, %1, %c0_i32_0 : i32
    scf.if %2 {
      %cst_12 = arith.constant 0.000000e+00 : f32
      %17 = vector.broadcast %cst_12 : f32 to vector<8x256xf32>
      %c0_13 = arith.constant 0 : index
      %c0_14 = arith.constant 0 : index
      %18 = vector.load %arg8[%c0_13, %c0_14] : memref<8x256xf32, #tpu.memory_space<vmem>>, vector<8x256xf32>
      tpu.vector_store %arg8[%c0_13, %c0_14], %17 {strides = array<i32>} : memref<8x256xf32, #tpu.memory_space<vmem>>, vector<8x256xf32>,
    } else {
    }
    %c0 = arith.constant 0 : index
    %c0_1 = arith.constant 0 : index
    %c0_2 = arith.constant 0 : index
    %3 = vector.load %arg3[%c0, %c0_1, %c0_2] : memref<8x8x128xbf16, #tpu.memory_space<vmem>>, vector<8x8x128xbf16>
    %4 = vector.shape_cast %3 : vector<8x8x128xbf16> to vector<64x128xbf16>
    %c0_3 = arith.constant 0 : index
    %c0_4 = arith.constant 0 : index
    %5 = vector.load %arg4[%c0_3, %c0_4] : memref<128x256xbf16, #tpu.memory_space<vmem>>, vector<128x256xbf16>
    %cst = arith.constant dense<0.000000e+00> : vector<64x256xf32>
    %6 = tpu.matmul %4, %5, %cst {dimension_numbers = #tpu.dot_dimension_numbers<[1], [0], [0], [1], [0, 0, 1, 1], [], []>} : vector<64x128xbf16>, vector<128x256xbf16>, vector<64x256xf32> -> vector<64x256xf32>
    %cst_5 = arith.constant 0.000000e+00 : f32
    %7 = vector.broadcast %cst_5 : f32 to vector<64x256xf32>
    %8 = arith.maximumf %6, %7 : vector<64x256xf32>
    %c0_6 = arith.constant 0 : index
    %c0_7 = arith.constant 0 : index
    %9 = vector.load %arg8[%c0_6, %c0_7] : memref<8x256xf32, #tpu.memory_space<vmem>>, vector<8x256xf32>
    %10 = vector.shape_cast %8 : vector<64x256xf32> to vector<8x8x256xf32>
    %cst_8 = arith.constant dense<0.000000e+00> : vector<8x256xf32>
    %11 = vector.multi_reduction <add>, %10, %cst_8 [1] : vector<8x8x256xf32> to vector<8x256xf32>
    %12 = arith.addf %9, %11 : vector<8x256xf32>
    %c0_9 = arith.constant 0 : index
    %c0_10 = arith.constant 0 : index
    %13 = vector.load %arg8[%c0_9, %c0_10] : memref<8x256xf32, #tpu.memory_space<vmem>>, vector<8x256xf32>
    tpu.vector_store %arg8[%c0_9, %c0_10], %12 {strides = array<i32>} : memref<8x256xf32, #tpu.memory_space<vmem>>, vector<8x256xf32>,
    %c1_i32 = arith.constant 1 : i32
    %14 = arith.cmpi eq, %arg2, %c1_i32 : i32
    %15 = arith.extui %14 : i1 to i32
    %c0_i32_11 = arith.constant 0 : i32
    %16 = arith.cmpi ne, %15, %c0_i32_11 : i32
    scf.if %16 {
      %c0_12 = arith.constant 0 : index
      %c0_13 = arith.constant 0 : index
      %17 = vector.load %arg8[%c0_12, %c0_13] : memref<8x256xf32, #tpu.memory_space<vmem>>, vector<8x256xf32>
      %cst_14 = arith.constant 6.250000e-02 : f32
      %18 = vector.broadcast %cst_14 : f32 to vector<8x256xf32>
      %19 = arith.mulf %17, %18 : vector<8x256xf32>
      %c0_15 = arith.constant 0 : index
      %c0_16 = arith.constant 0 : index
      %20 = vector.load %arg5[%c0_15, %c0_16] : memref<2x256xf32, #tpu.memory_space<vmem>>, vector<2x256xf32>
      %c0_17 = arith.constant 0 : index
      %c0_18 = arith.constant 0 : index
      %21 = vector.load %arg6[%c0_17, %c0_18] : memref<2x256xf32, #tpu.memory_space<vmem>>, vector<2x256xf32>
      %22 = vector.extract_strided_slice %20 {offsets = [0, 0], sizes = [1, 256], strides = [1, 1]} : vector<2x256xf32> to vector<1x256xf32>
      %23 = vector.broadcast %22 : vector<1x256xf32> to vector<8x256xf32>
      %24 = arith.mulf %19, %23 : vector<8x256xf32>
      %25 = vector.extract_strided_slice %21 {offsets = [0, 0], sizes = [1, 256], strides = [1, 1]} : vector<2x256xf32> to vector<1x256xf32>
      %26 = vector.broadcast %25 : vector<1x256xf32> to vector<8x256xf32>
      %27 = arith.addf %24, %26 : vector<8x256xf32>
      %c0_19 = arith.constant 0 : index
      %c0_20 = arith.constant 0 : index
      %c0_21 = arith.constant 0 : index
      %28 = vector.load %arg7[%c0_19, %c0_20, %c0_21] : memref<2x8x256xf32, #tpu.memory_space<vmem>>, vector<1x8x256xf32>
      %29 = vector.shape_cast %28 : vector<1x8x256xf32> to vector<8x256xf32>
      %30 = vector.shape_cast %27 : vector<8x256xf32> to vector<1x8x256xf32>
      tpu.vector_store %arg7[%c0_19, %c0_20, %c0_21], %30 {strides = array<i32>} : memref<2x8x256xf32, #tpu.memory_space<vmem>>, vector<1x8x256xf32>,
      %31 = vector.extract_strided_slice %20 {offsets = [1, 0], sizes = [1, 256], strides = [1, 1]} : vector<2x256xf32> to vector<1x256xf32>
      %32 = vector.broadcast %31 : vector<1x256xf32> to vector<8x256xf32>
      %33 = arith.mulf %19, %32 : vector<8x256xf32>
      %34 = vector.extract_strided_slice %21 {offsets = [1, 0], sizes = [1, 256], strides = [1, 1]} : vector<2x256xf32> to vector<1x256xf32>
      %35 = vector.broadcast %34 : vector<1x256xf32> to vector<8x256xf32>
      %36 = arith.addf %33, %35 : vector<8x256xf32>
      %c1 = arith.constant 1 : index
      %c0_22 = arith.constant 0 : index
      %c0_23 = arith.constant 0 : index
      %37 = vector.load %arg7[%c1, %c0_22, %c0_23] : memref<2x8x256xf32, #tpu.memory_space<vmem>>, vector<1x8x256xf32>
      %38 = vector.shape_cast %37 : vector<1x8x256xf32> to vector<8x256xf32>
      %39 = vector.shape_cast %36 : vector<8x256xf32> to vector<1x8x256xf32>
      tpu.vector_store %arg7[%c1, %c0_22, %c0_23], %39 {strides = array<i32>} : memref<2x8x256xf32, #tpu.memory_space<vmem>>, vector<1x8x256xf32>,
    } else {
    }
    return
  }
  func.func @transform_0(%arg0: i32, %arg1: i32, %arg2: i32) -> (i32, i32, i32) {
    %c0_i32 = arith.constant 0 : i32
    %c0_i32_0 = arith.constant 0 : i32
    return %arg0, %arg2, %c0_i32 : i32, i32, i32
  }
  func.func @transform_1(%arg0: i32, %arg1: i32, %arg2: i32) -> (i32, i32) {
    %c0_i32 = arith.constant 0 : i32
    %c0_i32_0 = arith.constant 0 : i32
    return %c0_i32, %arg1 : i32, i32
  }
  func.func @transform_2(%arg0: i32, %arg1: i32, %arg2: i32) -> (i32, i32) {
    %c0_i32 = arith.constant 0 : i32
    %c0_i32_0 = arith.constant 0 : i32
    return %c0_i32, %arg1 : i32, i32
  }
  func.func @transform_3(%arg0: i32, %arg1: i32, %arg2: i32) -> (i32, i32) {
    %c0_i32 = arith.constant 0 : i32
    %c0_i32_0 = arith.constant 0 : i32
    return %c0_i32, %arg1 : i32, i32
  }
  func.func @transform_4(%arg0: i32, %arg1: i32, %arg2: i32) -> (i32, i32, i32) {
    %c0_i32 = arith.constant 0 : i32
    %c0_i32_0 = arith.constant 0 : i32
    return %c0_i32, %arg0, %arg1 : i32, i32, i32
  }
}

</mosaic_0001>

<bundles_post_ra>
// kernel: densenet121_reid_forward.1
= control target key start
LH: loop header
LB: loop body
LE: loop exit
PB: predicated region body
PF: predicated region fallthrough
CT: control target
= control target key end

     0   :  { %s1550_s0 = inlined_call_operand.vmem [shape: bf16[8,16,128], index: 0, kind: input, shape index: {}]   ;;  %s1551_s1 = inlined_call_operand.vmem [shape: bf16[128,1024], index: 1, kind: input, shape index: {}]   ;;  %s1552_s2 = inlined_call_operand.vmem [shape: f32[2,1024], index: 2, kind: input, shape index: {}]   ;;  %s1553_s3 = inlined_call_operand.vmem [shape: f32[2,1024], index: 3, kind: input, shape index: {}]   ;;  %s1554_s4 = inlined_call_operand.vmem [shape: f32[2,8,1024], index: 4, kind: output, shape index: {}]  }
   0x1   :  { %1555 = sst [smem:[#allocation6_spill]] %s1550_s0 }
   0x2   :  { %1556 = sst [smem:[#allocation7_spill]] %s1551_s1 }
   0x3   :  { %s1329_s15 = smov 0   ;;  %s1331_s16 = smov 0  }
   0x4   :  { %s1333_s17 = smov 0   ;;  %s1335_s18 = smov 0  }
   0x5   :  { %s1337_s19 = smov 0   ;;  %s1339_s20 = smov 0  }
   0x6   :  { %s1341_s21 = smov 0   ;;  %s1343_s22 = smov 0  }
   0x7   :  { %s1345_s23 = smov 0  }
   0x8 LB: > { %s1064_s24 = sadd.s32 4294967295, %s1300_s23   ;;  %s26_s25 = sadd.s32 1, %s1292_s21  ;;  %s1300_s23 = sphi %s1345_s23, %s14_s23   ;;  %s1296_s22 = sphi %s1343_s22, %s1568_s22   ;;  %s1292_s21 = sphi %s1341_s21, %s1567_s21   ;;  %s1288_s20 = sphi %s1339_s20, %s1566_s20   ;;  %s1284_s19 = sphi %s1337_s19, %s1565_s19   ;;  %s1280_s18 = sphi %s1335_s18, %s1564_s18   ;;  %s1276_s17 = sphi %s1333_s17, %s1563_s17   ;;  %s1272_s16 = sphi %s1331_s16, %s1562_s16   ;;  %s1268_s15 = sphi %s1329_s15, %s1561_s15  }
   0x9   : > { %p27_p0 = scmp.ge.s32.totalorder %s26_s25, 2  ;;  %s29_s26 = sadd.s32 1, %s1296_s22 }
   0xa   : > { %s42_s27 = sadd.s32 1, %s1280_s18  ;;  %p49_p1 = scmp.ne.s32.totalorder %s1280_s18, %s1276_s17 }
   0xb   : > { %s1570_s25 = smov (%p27_p0, %s26_s25), 0  ;;  %s1572_s26 = smov (!%p27_p0, %s29_s26), %s1296_s22 }
   0xc   : > { %s38_s28 = ssub.s32 %s1292_s21, %s1570_s25  ;;  %p50_p2 = scmp.eq.s32.totalorder %s1300_s23, 0 }
   0xd   : > { %p31_p3 = scmp.ge.s32.totalorder %s1572_s26, 4  ;;  %p40_p4 = scmp.eq.s32.totalorder %s38_s28, 0 }
   0xe   : > { %p51_p5 = por %p50_p2, %p49_p1  ;;  %s68_s29 = sadd.s32 1, %s1272_s16 }
   0xf   : > { %s1574_s26 = smov (%p31_p3, %s1572_s26), 0  ;;  %p75_p6 = scmp.ne.s32.totalorder %s1272_s16, %s1268_s15 }
  0x10   : > { %s1390_s30 = scalar_select %p40_p4, %s1280_s18, %s42_s27  }
  0x11   : > { %s65_s5 = ssub.s32 %s1296_s22, %s1574_s26  ;;  %p159_p8 = scmp.eq.s32.totalorder %s1064_s24, 7 }
  0x12   : > { %p66_p7 = scmp.eq.s32.totalorder %s65_s5, 0  ;;  %p1396_p9 = por %p75_p6, %p50_p2 }
  0x13   : > { %p1403_p10 = por %p159_p8, %p75_p6  ;;  %p1067_p11 = scmp.ge.s32.totalorder %s1300_s23, 8 }
  0x14   : > { %s1401_s7 = scalar_select %p66_p7, %s1272_s16, %s68_s29  }
  0x15   : > { %181 = sbr.rel (%p1067_p11) target bundleno = 69 (0x45), region = 16 }
  0x1c   : > { %184 = sbr.rel (!%p51_p5) target bundleno = 43 (0x2b), region = 20  ;;  %s186_s9 = sand.u32 (%p51_p5), 1, %s1280_s18  }
  0x1d   : > { %s1069_s10 = sshll.u32 (%p51_p5), %s1292_s21, 2  ;;  %s1068_s11 = sshll.u32 (%p51_p5), %s186_s9, 5 }
  0x1e   : > { %s1559_s0 = sld [smem:[#allocation6_spill]] (%p51_p5)  ;;  %s188_s24 = scalar_lea.vmem (%p51_p5), [#allocation3], %s1068_s11 }
  0x24   : > { %s193_s14 = scalar_lea.vmem %s1559_s0, %s1069_s10 }
  0x25   : > { %v209_v0 = vld [vmem:[%s193_s14] sm:$0xf]  ;;  %v211_v1 = vld [vmem:[%s193_s14 + $0x8] sm:$0xf]  ;;  %v213_v2 = vld [vmem:[%s193_s14 + $0x10] sm:$0xf] }
  0x26   : > { %210 = vst [vmem:[%s188_s24] sm:$0xf] %v209_v0  ;;  %212 = vst [vmem:[%s188_s24 + $0x4] sm:$0xf] %v211_v1  ;;  %v215_v3 = vld [vmem:[%s193_s14 + $0x18] sm:$0xf] }
  0x27   : > { %v217_v4 = vld [vmem:[%s193_s14 + $0x20] sm:$0xf]  ;;  %214 = vst [vmem:[%s188_s24 + $0x8] sm:$0xf] %v213_v2  ;;  %216 = vst [vmem:[%s188_s24 + $0xc] sm:$0xf] %v215_v3 }
  0x28   : > { %218 = vst [vmem:[%s188_s24 + $0x10] sm:$0xf] %v217_v4  ;;  %v219_v5 = vld [vmem:[%s193_s14 + $0x28] sm:$0xf]  ;;  %v221_v6 = vld [vmem:[%s193_s14 + $0x30] sm:$0xf] }
  0x29   : > { %v223_v7 = vld [vmem:[%s193_s14 + $0x38] sm:$0xf]  ;;  %220 = vst [vmem:[%s188_s24 + $0x14] sm:$0xf] %v219_v5  ;;  %222 = vst [vmem:[%s188_s24 + $0x18] sm:$0xf] %v221_v6 }
  0x2a   : > { %224 = vst [vmem:[%s188_s24 + $0x1c] sm:$0xf] %v223_v7 }
  0x2b PF: > { %263 = sbr.rel (!%p1396_p9) target bundleno = 69 (0x45), region = 61  ;;  %s265_s27 = sand.u32 (%p1396_p9), 1, %s1272_s16  }
  0x2c   : > { %s1110_s28 = sshll.u32 (%p1396_p9), %s1296_s22, 3  ;;  %s1070_s29 = sshll.u32 (%p1396_p9), %s265_s27, 7 }
  0x2d   : > { %s1560_s1 = sld [smem:[#allocation7_spill]] (%p1396_p9)  ;;  %s267_s6 = scalar_lea.vmem (%p1396_p9), [#allocation4], %s1070_s29 }
  0x33   : > { %s1420_s10 = scalar_lea.vmem %s1560_s1, %s1110_s28 }
  0x34   : > { %v328_v8 = vld [vmem:[%s1420_s10] sm:$0xff] }
  0x35   : > { %v330_v9 = vld [vmem:[%s1420_s10 + $0x20] sm:$0xff]  ;;  %329 = vst [vmem:[%s267_s6] sm:$0xff] %v328_v8 }
  0x36   : > { %v332_v10 = vld [vmem:[%s1420_s10 + $0x40] sm:$0xff]  ;;  %331 = vst [vmem:[%s267_s6 + $0x8] sm:$0xff] %v330_v9 }
  0x37   : > { %333 = vst [vmem:[%s267_s6 + $0x10] sm:$0xff] %v332_v10  ;;  %v334_v11 = vld [vmem:[%s1420_s10 + $0x60] sm:$0xff] }
  0x38   : > { %v336_v12 = vld [vmem:[%s1420_s10 + $0x80] sm:$0xff]  ;;  %335 = vst [vmem:[%s267_s6 + $0x18] sm:$0xff] %v334_v11 }
  0x39   : > { %v338_v13 = vld [vmem:[%s1420_s10 + $0xa0] sm:$0xff]  ;;  %337 = vst [vmem:[%s267_s6 + $0x20] sm:$0xff] %v336_v12 }
  0x3a   : > { %339 = vst [vmem:[%s267_s6 + $0x28] sm:$0xff] %v338_v13  ;;  %v340_v14 = vld [vmem:[%s1420_s10 + $0xc0] sm:$0xff] }
  0x3b   : > { %v342_v15 = vld [vmem:[%s1420_s10 + $0xe0] sm:$0xff]  ;;  %341 = vst [vmem:[%s267_s6 + $0x30] sm:$0xff] %v340_v14 }
  0x3c   : > { %v344_v16 = vld [vmem:[%s1420_s10 + $0x100] sm:$0xff]  ;;  %343 = vst [vmem:[%s267_s6 + $0x38] sm:$0xff] %v342_v15 }
  0x3d   : > { %345 = vst [vmem:[%s267_s6 + $0x40] sm:$0xff] %v344_v16  ;;  %v346_v17 = vld [vmem:[%s1420_s10 + $0x120] sm:$0xff] }
  0x3e   : > { %v348_v18 = vld [vmem:[%s1420_s10 + $0x140] sm:$0xff]  ;;  %347 = vst [vmem:[%s267_s6 + $0x48] sm:$0xff] %v346_v17 }
  0x3f   : > { %v350_v19 = vld [vmem:[%s1420_s10 + $0x160] sm:$0xff]  ;;  %349 = vst [vmem:[%s267_s6 + $0x50] sm:$0xff] %v348_v18 }
  0x40   : > { %351 = vst [vmem:[%s267_s6 + $0x58] sm:$0xff] %v350_v19  ;;  %v352_v20 = vld [vmem:[%s1420_s10 + $0x180] sm:$0xff] }
  0x41   : > { %v354_v21 = vld [vmem:[%s1420_s10 + $0x1a0] sm:$0xff]  ;;  %353 = vst [vmem:[%s267_s6 + $0x60] sm:$0xff] %v352_v20 }
  0x42   : > { %v356_v22 = vld [vmem:[%s1420_s10 + $0x1c0] sm:$0xff]  ;;  %355 = vst [vmem:[%s267_s6 + $0x68] sm:$0xff] %v354_v21 }
  0x43   : > { %357 = vst [vmem:[%s267_s6 + $0x70] sm:$0xff] %v356_v22  ;;  %v358_v23 = vld [vmem:[%s1420_s10 + $0x1e0] sm:$0xff] }
  0x44   : > { %359 = vst [vmem:[%s267_s6 + $0x78] sm:$0xff] %v358_v23 }
  0x45 PF: > { %p1073_p12 = scmp.ge.s32.totalorder %s1300_s23, 1  ;;  %p382_p13 = scmp.lt.s32.totalorder %s1300_s23, 9 }
  0x47   : > { %p383_p0 = pnand %p1073_p12, %p382_p13 }
  0x48   : > { %s389_s11 = sand.u32 (!%p383_p0), 1, %s1276_s17   ;;  %s396_s12 = sand.u32 (!%p383_p0), 1, %s1268_s15  }
  0x49   : > { %386 = sbr.rel (%p383_p0) target bundleno = 393 (0x189), region = 107  ;;  %s1074_s13 = sshll.u32 (!%p383_p0), %s389_s11, 5 }
  0x4a   : > { %s1075_s14 = sshll.u32 (!%p383_p0), %s396_s12, 7  ;;  %s1076_s24 = sshll.u32 (!%p383_p0), %s396_s12, 5 }
  0x4b   : > { %s1077_s27 = sshll.u32 (!%p383_p0), %s1288_s20, 1  ;;  %s1453_s1 = scalar_lea.vmem (!%p383_p0), [#allocation3], %s1074_s13 }
  0x4c   : > { %p437_p1 = scmp.lt.s32.totalorder (!%p383_p0), %s1077_s27, 7  ;;  %s1455_s15 = scalar_lea.vmem (!%p383_p0), [#allocation4], %s1075_s14 }
  0x4d   : > { %s1457_s17 = scalar_lea.vmem (!%p383_p0), [#allocation5], %s1076_s24  ;;  %p1081_p2 = scmp.ne.s32.totalorder (!%p383_p0), %s1284_s19, 0 }
  0x50   : > { %s1576_s27 = smov (!%p437_p1, %s1077_s27), 7  ;;  %453 = sbr.rel (%p1081_p2) target bundleno = 87 (0x57), region = 119 }
  0x51   : > { %s1078_s28 = sshll.u32 %s1576_s27, 1  ;;  %v1302_v24 = vmov (!%p1081_p2), 0.0  }
  0x52   : > { %s1446_s9 = scalar_lea.vmem %s1552_s2, %s1078_s28  ;;  %s1451_s0 = scalar_lea.vmem %s1553_s3, %s1078_s28  ;;  %454 = vst [vmem:[#allocation2] sm:$0xff] (!%p1081_p2), %v1302_v24  ;;  %455 = vst [vmem:[#allocation2 + $0x8] sm:$0xff] (!%p1081_p2), %v1302_v24 }
  0x57 PF: > { %v1202_v25 = vld [vmem:[%s1455_s15 + $0x4] ss:$8 sps:$4 sm:$0xff]   ;;  %v1204_v26 = vld [vmem:[%s1455_s15] ss:$8 sps:$4 sm:$0xff]   ;;  %v1303_v27 = vmov 0   ;;  %v1227_v43 = vld [vmem:[%s1453_s1 + $0x10] sm:$0xff]  }
  0x58   : > { %616 = vmatprep.mubr.bf16.mxu0 %v1303_v27  ;;  %636 = vmatprep.mubr.bf16.mxu1 %v1303_v27  ;;  %v1205_v28 = vld [vmem:[%s1455_s15 + $0x14] ss:$8 sps:$4 sm:$0xff]   ;;  %v1207_v29 = vld [vmem:[%s1455_s15 + $0x10] ss:$8 sps:$4 sm:$0xff]   ;;  %v1208_v30 = vld [vmem:[%s1455_s15 + $0x24] ss:$8 sps:$4 sm:$0xff]  }
  0x59   : > { %584 = vmatprep.subr.bf16.mxu0 %v1202_v25  ;;  %1112 = vmatprep.subr.bf16.mxu1 %v1202_v25  ;;  %v1210_v31 = vld [vmem:[%s1455_s15 + $0x20] ss:$8 sps:$4 sm:$0xff]   ;;  %v1211_v32 = vld [vmem:[%s1455_s15 + $0x34] ss:$8 sps:$4 sm:$0xff]   ;;  %v1213_v33 = vld [vmem:[%s1455_s15 + $0x30] ss:$8 sps:$4 sm:$0xff]  }
  0x5a   : > { %585 = vmatpush1.bf16.msra.mxu0 %v1204_v26  ;;  %1120 = vmatpush1.bf16.msra.mxu1 %v1204_v26  ;;  %v1214_v34 = vld [vmem:[%s1455_s15 + $0x44] ss:$8 sps:$4 sm:$0xff]   ;;  %v1216_v35 = vld [vmem:[%s1455_s15 + $0x40] ss:$8 sps:$4 sm:$0xff]   ;;  %v1217_v36 = vld [vmem:[%s1455_s15 + $0x54] ss:$8 sps:$4 sm:$0xff]  }
  0x5b   : > { %586 = vmatprep.subr.bf16.mxu0 %v1205_v28  ;;  %1113 = vmatprep.subr.bf16.mxu1 %v1205_v28  ;;  %v1219_v37 = vld [vmem:[%s1455_s15 + $0x50] ss:$8 sps:$4 sm:$0xff]   ;;  %v1220_v38 = vld [vmem:[%s1455_s15 + $0x64] ss:$8 sps:$4 sm:$0xff]   ;;  %v1222_v39 = vld [vmem:[%s1455_s15 + $0x60] ss:$8 sps:$4 sm:$0xff]  }
  0x5c   : > { %v1223_v40 = vld [vmem:[%s1455_s15 + $0x74] ss:$8 sps:$4 sm:$0xff]   ;;  %v1225_v41 = vld [vmem:[%s1455_s15 + $0x70] ss:$8 sps:$4 sm:$0xff]   ;;  %v1226_v42 = vld [vmem:[%s1453_s1] sm:$0xff]   ;;  %vm787_vm0 = vcmask 1041409  }
  0x5d   : > { %v1228_v44 = vld [vmem:[%s1453_s1 + $0x8] sm:$0xff]   ;;  %v1229_v45 = vld [vmem:[%s1453_s1 + $0x18] sm:$0xff]   ;;  %vm789_vm1 = vcmask 1042434   ;;  %vm791_vm2 = vcmask 1043459   ;;  %vm793_vm3 = vcmask 1044484   ;;  %vm795_vm4 = vcmask 1045509  }
  0x5e   : > { %587 = vmatpush1.bf16.msra.mxu0 %v1207_v29  ;;  %1121 = vmatpush1.bf16.msra.mxu1 %v1207_v29  ;;  %vm797_vm5 = vcmask 1046534   ;;  %vm799_vm6 = vcmask 1047559   ;;  %p1102_p3 = scmp.ne.s32.totalorder %s1284_s19, 1 }
  0x5f   : > { %588 = vmatprep.subr.bf16.mxu0 %v1208_v30  ;;  %1114 = vmatprep.subr.bf16.mxu1 %v1208_v30 }
  0x62   : > { %589 = vmatpush1.bf16.msra.mxu0 %v1210_v31  ;;  %1122 = vmatpush1.bf16.msra.mxu1 %v1210_v31 }
  0x63   : > { %590 = vmatprep.subr.bf16.mxu0 %v1211_v32  ;;  %1115 = vmatprep.subr.bf16.mxu1 %v1211_v32 }
  0x66   : > { %591 = vmatpush1.bf16.msra.mxu0 %v1213_v33  ;;  %1123 = vmatpush1.bf16.msra.mxu1 %v1213_v33 }
  0x67   : > { %592 = vmatprep.subr.bf16.mxu0 %v1214_v34  ;;  %1116 = vmatprep.subr.bf16.mxu1 %v1214_v34 }
  0x6a   : > { %593 = vmatpush1.bf16.msra.mxu0 %v1216_v35  ;;  %1124 = vmatpush1.bf16.msra.mxu1 %v1216_v35 }
  0x6b   : > { %594 = vmatprep.subr.bf16.mxu0 %v1217_v36  ;;  %1117 = vmatprep.subr.bf16.mxu1 %v1217_v36 }
  0x6e   : > { %595 = vmatpush1.bf16.msra.mxu0 %v1219_v37  ;;  %1125 = vmatpush1.bf16.msra.mxu1 %v1219_v37 }
  0x6f   : > { %596 = vmatprep.subr.bf16.mxu0 %v1220_v38  ;;  %1118 = vmatprep.subr.bf16.mxu1 %v1220_v38 }
  0x72   : > { %597 = vmatpush1.bf16.msra.mxu0 %v1222_v39  ;;  %1126 = vmatpush1.bf16.msra.mxu1 %v1222_v39 }
  0x73   : > { %598 = vmatprep.subr.bf16.mxu0 %v1223_v40  ;;  %1119 = vmatprep.subr.bf16.mxu1 %v1223_v40 }
  0x76   : > { %599 = vmatpush1.bf16.msra.mxu0 %v1225_v41  ;;  %1127 = vmatpush1.bf16.msra.mxu1 %v1225_v41 }
  0x79   : > { %617 = vmatmul.mubr.bf16.vlgmr.msra.gmra.mrb[0].mxu0 %v1226_v42  ;;  %637 = vmatmul.mubr.bf16.vlgmr.msra.gmra.mrb[0].mxu1 %v1227_v43 }
  0x7a   : > { %626 = vmatprep.mubr.bf16.mxu0 %v1303_v27  ;;  %646 = vmatprep.mubr.bf16.mxu1 %v1303_v27 }
  0x81   : > { %627 = vmatmul.mubr.bf16.gmra.mrb[4].mxu0 %v1228_v44  ;;  %647 = vmatmul.mubr.bf16.gmra.mrb[4].mxu1 %v1229_v45 }
 0x14c   : > { %v618_v46 = vpop.f32.mrb[0].mxu0  ;;  %v638_v47 = vpop.f32.mrb[0].mxu1 }
 0x14d   : > { %v657_v48 = vmax.f32 %v618_v46, 0.0  ;;  %v665_v49 = vmax.f32 %v638_v47, 0.0  ;;  %v620_v50 = vpop.f32.mrb[1].mxu0  ;;  %v640_v51 = vpop.f32.mrb[1].mxu1 }
 0x14e   : > { %v658_v52 = vmax.f32 %v620_v50, 0.0  ;;  %v666_v53 = vmax.f32 %v640_v51, 0.0  ;;  %v622_v54 = vpop.f32.mrb[2].mxu0  ;;  %v642_v55 = vpop.f32.mrb[2].mxu1 }
 0x14f   : > { %v675_v56 = vrot.slane %v657_v48, 4  ;;  %v723_v57 = vrot.slane %v665_v49, 4  ;;  %v659_v58 = vmax.f32 %v622_v54, 0.0  ;;  %v667_v59 = vmax.f32 %v642_v55, 0.0  ;;  %v624_v60 = vpop.f32.mrb[3].mxu0  ;;  %v644_v61 = vpop.f32.mrb[3].mxu1 }
 0x150   : > { %v681_v62 = vrot.slane %v658_v52, 4  ;;  %v729_v63 = vrot.slane %v666_v53, 4  ;;  %v660_v0 = vmax.f32 %v624_v60, 0.0  ;;  %v668_v1 = vmax.f32 %v644_v61, 0.0 }
 0x151   : > { %v676_v2 = vadd.f32 %v675_v56, %v657_v48  ;;  %v724_v3 = vadd.f32 %v723_v57, %v665_v49  ;;  %v687_v4 = vrot.slane %v659_v58, 4  ;;  %v735_v5 = vrot.slane %v667_v59, 4 }
 0x152   : > { %v682_v6 = vadd.f32 %v681_v62, %v658_v52  ;;  %v730_v7 = vadd.f32 %v729_v63, %v666_v53  ;;  %v693_v8 = vrot.slane %v660_v0, 4  ;;  %v741_v9 = vrot.slane %v668_v1, 4 }
 0x153   : > { %v677_v10 = vrot.slane %v676_v2, 2  ;;  %v725_v11 = vrot.slane %v724_v3, 2  ;;  %v688_v12 = vadd.f32 %v687_v4, %v659_v58  ;;  %v736_v13 = vadd.f32 %v735_v5, %v667_v59 }
 0x154   : > { %v683_v14 = vrot.slane %v682_v6, 2  ;;  %v694_v15 = vadd.f32 %v693_v8, %v660_v0  ;;  %v628_v16 = vpop.f32.mrb[4].mxu0  ;;  %v648_v17 = vpop.f32.mrb[4].mxu1  ;;  %v731_v19 = vrot.slane %v730_v7, 2  ;;  %v742_v21 = vadd.f32 %v741_v9, %v668_v1 }
 0x155   : > { %v678_v18 = vadd.f32 %v677_v10, %v676_v2  ;;  %v689_v20 = vrot.slane %v688_v12, 2  ;;  %v630_v22 = vpop.f32.mrb[5].mxu0  ;;  %v650_v23 = vpop.f32.mrb[5].mxu1  ;;  %v1480_v24 = vadd.f32 %v725_v11, %v724_v3  ;;  %v737_v26 = vrot.slane %v736_v13, 2 }
 0x156   : > { %v684_v25 = vadd.f32 %v683_v14, %v682_v6  ;;  %v695_v27 = vrot.slane %v694_v15, 2  ;;  %v632_v28 = vpop.f32.mrb[6].mxu0  ;;  %v652_v29 = vpop.f32.mrb[6].mxu1  ;;  %v1482_v36 = vadd.f32 %v731_v19, %v730_v7  ;;  %v743_v41 = vrot.slane %v742_v21, 2 }
 0x157   : > { %v679_v30 = vrot.slane %v678_v18, 1  ;;  %v690_v31 = vadd.f32 %v689_v20, %v688_v12  ;;  %v634_v32 = vpop.f32.mrb[7].mxu0  ;;  %v654_v33 = vpop.f32.mrb[7].mxu1  ;;  %v727_v38 = vrot.slane %v1480_v24, 1  ;;  %v1485_v39 = vadd.f32 %v737_v26, %v736_v13 }
 0x158   : > { %v685_v34 = vrot.slane %v684_v25, 1  ;;  %v696_v35 = vadd.f32 %v695_v27, %v694_v15  ;;  %v661_v44 = vmax.f32 %v628_v16, 0.0  ;;  %v669_v45 = vmax.f32 %v648_v17, 0.0 }
 0x159   : > { %v691_v37 = vrot.slane %v690_v31, 1  ;;  %v680_v42 = vadd.f32 %v679_v30, %v678_v18  ;;  %v662_v48 = vmax.f32 %v630_v22, 0.0  ;;  %v670_v49 = vmax.f32 %v650_v23, 0.0 }
 0x15a   : > { %v697_v40 = vrot.slane %v696_v35, 1  ;;  %v686_v46 = vadd.f32 %v685_v34, %v684_v25  ;;  %v699_v51 = vrot.slane %v661_v44, 4  ;;  %v747_v52 = vrot.slane %v669_v45, 4 }
 0x15b   : > { %v692_v43 = vadd.f32 %v691_v37, %v690_v31  ;;  %v663_v53 = vmax.f32 %v632_v28, 0.0  ;;  %v705_v55 = vrot.slane %v662_v48, 4  ;;  %v753_v56 = vrot.slane %v670_v49, 4 }
 0x15c   : > { %v698_v47 = vadd.f32 %v697_v40, %v696_v35  ;;  %v671_v57 = vmax.f32 %v652_v29, 0.0  ;;  %v700_v58 = vadd.f32 %v699_v51, %v661_v44  ;;  %v748_v59 = vadd.f32 %v747_v52, %v669_v45 }
 0x15d   : > { %v788_v50 = vsel %vm787_vm0, %v692_v43, %v680_v42  ;;  %v711_v60 = vrot.slane %v663_v53, 4  ;;  %v664_v61 = vmax.f32 %v634_v32, 0.0  ;;  %v706_v62 = vadd.f32 %v705_v55, %v662_v48 }
 0x15e   : > { %v801_v54 = vsel %vm787_vm0, %v698_v47, %v686_v46  ;;  %v754_v63 = vadd.f32 %v753_v56, %v670_v49  ;;  %v759_v0 = vrot.slane %v671_v57, 4  ;;  %v672_v1 = vmax.f32 %v654_v33, 0.0 }
 0x15f   : > { %v701_v2 = vrot.slane %v700_v58, 2  ;;  %v749_v3 = vrot.slane %v748_v59, 2  ;;  %v712_v4 = vadd.f32 %v711_v60, %v663_v53  ;;  %v717_v5 = vrot.slane %v664_v61, 4  ;;  %v673_v53 = vld [vmem:[#allocation2] sm:$0xff] }
 0x160   : > { %v707_v6 = vrot.slane %v706_v62, 2  ;;  %v755_v7 = vrot.slane %v754_v63, 2  ;;  %v760_v8 = vadd.f32 %v759_v0, %v671_v57  ;;  %v765_v9 = vrot.slane %v672_v1, 4 }
 0x161   : > { %v744_v10 = vadd.f32 %v743_v41, %v742_v21  ;;  %v702_v11 = vadd.f32 %v701_v2, %v700_v58  ;;  %v713_v12 = vrot.slane %v712_v4, 2  ;;  %v718_v13 = vadd.f32 %v717_v5, %v664_v61  ;;  %v674_v58 = vld [vmem:[#allocation2 + $0x8] sm:$0xff]  ;;  %v823_v5 = vld [vmem:[%s1451_s0] sm:$0xf] (!%p1102_p3) }
 0x162   : > { %v750_v14 = vadd.f32 %v749_v3, %v748_v59  ;;  %v708_v15 = vadd.f32 %v707_v6, %v706_v62  ;;  %v761_v16 = vrot.slane %v760_v8, 2  ;;  %v766_v17 = vadd.f32 %v765_v9, %v672_v1 }
 0x163   : > { %v733_v18 = vrot.slane %v1482_v36, 1  ;;  %v703_v19 = vrot.slane %v702_v11, 1  ;;  %v714_v20 = vadd.f32 %v713_v12, %v712_v4  ;;  %v719_v22 = vrot.slane %v718_v13, 2  ;;  %v822_v4 = vld [vmem:[%s1446_s9] sm:$0xf] (!%p1102_p3) }
 0x164   : > { %v709_v23 = vrot.slane %v708_v15, 1  ;;  %v756_v25 = vadd.f32 %v755_v7, %v754_v63  ;;  %v762_v26 = vadd.f32 %v761_v16, %v760_v8  ;;  %v767_v27 = vrot.slane %v766_v17, 2 }
 0x165   : > { %v739_v28 = vrot.slane %v1485_v39, 1  ;;  %v704_v29 = vadd.f32 %v703_v19, %v702_v11  ;;  %v715_v21 = vrot.slane %v714_v20, 1  ;;  %v720_v30 = vadd.f32 %v719_v22, %v718_v13 }
 0x166   : > { %v745_v31 = vrot.slane %v744_v10, 1  ;;  %v751_v32 = vrot.slane %v750_v14, 1  ;;  %v710_v33 = vadd.f32 %v709_v23, %v708_v15  ;;  %v768_v34 = vadd.f32 %v767_v27, %v766_v17 }
 0x167   : > { %v790_v35 = vsel %vm789_vm1, %v704_v29, %v788_v50  ;;  %v716_v37 = vadd.f32 %v715_v21, %v714_v20  ;;  %v763_v40 = vrot.slane %v762_v26, 1  ;;  %v721_v41 = vrot.slane %v720_v30, 1 }
 0x168   : > { %v728_v42 = vadd.f32 %v727_v38, %v1480_v24  ;;  %v802_v43 = vsel %vm789_vm1, %v710_v33, %v801_v54  ;;  %v757_v44 = vrot.slane %v756_v25, 1  ;;  %v740_v45 = vadd.f32 %v739_v28, %v1485_v39 }
 0x169   : > { %v792_v46 = vsel %vm791_vm2, %v716_v37, %v790_v35  ;;  %v722_v47 = vadd.f32 %v721_v41, %v720_v30  ;;  %v769_v48 = vrot.slane %v768_v34, 1  ;;  %v734_v49 = vadd.f32 %v733_v18, %v1482_v36 }
 0x16a   : > { %v752_v50 = vadd.f32 %v751_v32, %v750_v14  ;;  %v794_v51 = vsel %vm793_vm3, %v728_v42, %v792_v46  ;;  %v746_v52 = vadd.f32 %v745_v31, %v744_v10  ;;  %v764_v55 = vadd.f32 %v763_v40, %v762_v26 }
 0x16b   : > { %v796_v24 = vsel %vm795_vm4, %v740_v45, %v794_v51  ;;  %v803_v38 = vsel %vm791_vm2, %v722_v47, %v802_v43  ;;  %v758_v54 = vadd.f32 %v757_v44, %v756_v25  ;;  %v770_v59 = vadd.f32 %v769_v48, %v768_v34 }
 0x16c   : > { %v798_v39 = vsel %vm797_vm5, %v752_v50, %v796_v24  ;;  %v804_v56 = vsel %vm793_vm3, %v734_v49, %v803_v38  ;;  %817 = sbr.rel (%p1102_p3) target bundleno = 385 (0x181), region = 123  ;;  %v825_v0 = vlaneseq (!%p1102_p3) }
 0x16d   : > { %v800_v57 = vsel %vm799_vm6, %v764_v55, %v798_v39  ;;  %v805_v36 = vsel %vm795_vm4, %v746_v52, %v804_v56 }
 0x16e   : > { %v810_v60 = vadd.f32 %v800_v57, %v673_v53  ;;  %v806_v61 = vsel %vm797_vm5, %v758_v54, %v805_v36  ;;  %v826_v2 = vshrl.u32 (!%p1102_p3), %v825_v0, 7 }
 0x16f   : > { %v807_v62 = vsel %vm799_vm6, %v770_v59, %v806_v61 }
 0x170   : > { %812 = vst [vmem:[#allocation2] sm:$0xff] %v810_v60  ;;  %v811_v63 = vadd.f32 %v807_v62, %v674_v58  ;;  %v827_v6 = vsub.s32 (!%p1102_p3), 0, %v826_v2  ;;  %v831_v7 = vsub.s32 (!%p1102_p3), 2, %v826_v2  ;;  %v870_v8 = vsub.s32 (!%p1102_p3), 1, %v826_v2 }
 0x171   : > { %v874_v9 = vsub.s32 (!%p1102_p3), 3, %v826_v2 }
 0x172   : > { %813 = vst [vmem:[#allocation2 + $0x8] sm:$0xff] %v811_v63  ;;  %v828_v12 = vrot.slane (!%p1102_p3), %v822_v4, %v827_v6  ;;  %v849_v13 = vrot.slane (!%p1102_p3), %v823_v5, %v827_v6  ;;  %v832_v14 = vrot.slane (!%p1102_p3), %v822_v4, %v831_v7  ;;  %v853_v15 = vrot.slane (!%p1102_p3), %v823_v5, %v831_v7 }
 0x173   : > { %v871_v16 = vrot.slane %v822_v4, %v870_v8  ;;  %v891_v17 = vrot.slane %v823_v5, %v870_v8  ;;  %v875_v18 = vrot.slane %v822_v4, %v874_v9  ;;  %v895_v19 = vrot.slane %v823_v5, %v874_v9 }
 0x174   : > { %v838_v20 = vrot.slane %v828_v12, %v827_v6  ;;  %v859_v22 = vrot.slane %v849_v13, %v827_v6  ;;  %v842_v23 = vrot.slane %v832_v14, %v827_v6  ;;  %v863_v25 = vrot.slane %v853_v15, %v827_v6 }
 0x175   : > { %v881_v26 = vrot.slane %v871_v16, %v870_v8  ;;  %v901_v27 = vrot.slane %v891_v17, %v870_v8  ;;  %v885_v28 = vrot.slane %v875_v18, %v870_v8  ;;  %v905_v29 = vrot.slane %v895_v19, %v870_v8 }
 0x177   : > { %v818_v1 = vld [vmem:[#allocation2] sm:$0xff] }
 0x178   : > { %v820_v10 = vmul.f32 0.0625, %v818_v1 }
 0x179   : > { %v819_v3 = vld [vmem:[#allocation2 + $0x8] sm:$0xff] }
 0x17a   : > { %v821_v11 = vmul.f32 0.0625, %v819_v3  ;;  %v843_v21 = vmul.f32 %v838_v20, %v820_v10  ;;  %v886_v31 = vmul.f32 %v881_v26, %v820_v10 }
 0x17c   : > { %v844_v30 = vmul.f32 %v842_v23, %v821_v11  ;;  %v887_v32 = vmul.f32 %v885_v28, %v821_v11  ;;  %v864_v33 = vadd.f32 %v859_v22, %v843_v21  ;;  %v906_v35 = vadd.f32 %v901_v27, %v886_v31 }
 0x17e   : > { %v865_v34 = vadd.f32 %v863_v25, %v844_v30  ;;  %v907_v37 = vadd.f32 %v905_v29, %v887_v32  ;;  %866 = vst [vmem:[%s1457_s17] sm:$0xff] %v864_v33  ;;  %1103 = vst [vmem:[%s1457_s17 + $0x10] sm:$0xff] %v906_v35 }
 0x180   : > { %867 = vst [vmem:[%s1457_s17 + $0x8] sm:$0xff] %v865_v34  ;;  %1104 = vst [vmem:[%s1457_s17 + $0x18] sm:$0xff] %v907_v37 }
 0x181 PF: > { %917 = sbr.rel (!%p1403_p10) target bundleno = 393 (0x189), region = 127  ;;  %s1111_s0 = sshll.u32 (%p1403_p10), %s1288_s20, 4 }
 0x182   : > { %s922_s11 = scalar_lea.vmem (%p1403_p10), %s1554_s4, %s1111_s0 }
 0x185   : > { %v935_v40 = vld [vmem:[%s1457_s17] sm:$0xff] (%p1403_p10)  ;;  %v939_v42 = vld [vmem:[%s1457_s17 + $0x10] sm:$0xff] (%p1403_p10) }
 0x186   : > { %936 = vst [vmem:[%s922_s11] sm:$0xff] (%p1403_p10), %v935_v40  ;;  %940 = vst [vmem:[%s922_s11 + $0x40] sm:$0xff] (%p1403_p10), %v939_v42 }
 0x187   : > { %v937_v41 = vld [vmem:[%s1457_s17 + $0x8] sm:$0xff] (%p1403_p10)  ;;  %v941_v43 = vld [vmem:[%s1457_s17 + $0x18] sm:$0xff] (%p1403_p10) }
 0x188   : > { %938 = vst [vmem:[%s922_s11 + $0x8] sm:$0xff] %v937_v41  ;;  %942 = vst [vmem:[%s922_s11 + $0x48] sm:$0xff] %v941_v43 }
 0x189 PF: > { %s14_s23 = sadd.s32 1, %s1300_s23   ;;  %s1561_s15 = smov %s1272_s16 }
 0x18a   : > { %p11_p4 = scmp.ge.s32.totalorder %s14_s23, 10   ;;  %s1562_s16 = smov %s1401_s7 }
 0x18b   : > { %s1563_s17 = smov %s1280_s18  ;;  %s1564_s18 = smov %s1390_s30 }
 0x18c   : > { %s1565_s19 = smov %s1292_s21  ;;  %s1566_s20 = smov %s1296_s22 }
 0x18d   : > { %s1567_s21 = smov %s1570_s25  ;;  %s1568_s22 = smov %s1574_s26 }
 0x18e   :  { %13 = sbr.rel (!%p11_p4) target bundleno = 8 (0x8), region = 196 }

</bundles_post_ra>
